<compile_context>
chip_gen: v7x
topology: tpu7x:2x2x1
jax: 0.10.0
libtpu: 0.0.40
codegen_flags: <defaults>
</compile_context>

<pallas_src>
import math

import jax
import jax.numpy as jnp
from jax.experimental import pallas as pl
from jax.experimental.pallas import tpu as pltpu

REG_MAX = 16          # same default as the PyTorch module
_N_CORES = 2          # leading parallel grid axis (v7x has 2 TCs; harmless elsewhere)
_EPS = 1e-7

# Hastings-style odd polynomial for atan on [0, 1] (max abs error ~1e-5 rad).
_A1, _A3, _A5, _A7, _A9 = 0.9998660, -0.3302995, 0.1801410, -0.0851330, 0.0208351


def _atan_pos(x):
    """arctan(x) for x >= 0 built from VPU-friendly ops (no native atan lowering)."""
    big = x > 1.0
    z = jnp.where(big, 1.0 / jnp.maximum(x, 1e-12), x)          # range-reduce to [0, 1]
    z2 = z * z
    p = z * (_A1 + z2 * (_A3 + z2 * (_A5 + z2 * (_A7 + z2 * _A9))))
    return jnp.where(big, (math.pi * 0.5) - p, p)


def _bbox_loss_kernel(pd_ref, pb_ref, tb_ref, anc_ref, w_ref, iou_out_ref, dfl_out_ref):
    t = pl.program_id(1)

    @pl.when(t == 0)
    def _init():
        iou_out_ref[...] = jnp.zeros_like(iou_out_ref)
        dfl_out_ref[...] = jnp.zeros_like(dfl_out_ref)

    pb = pb_ref[...]            # (4, T) pred  xyxy
    tb = tb_ref[...]            # (4, T) target xyxy
    anc = anc_ref[...]          # (2, T)
    w = w_ref[...]              # (1, T) = target_scores.sum(-1) * fg_mask

    b1x1, b1y1, b1x2, b1y2 = pb[0:1], pb[1:2], pb[2:3], pb[3:4]
    b2x1, b2y1, b2x2, b2y2 = tb[0:1], tb[1:2], tb[2:3], tb[3:4]

    # ------------------------------ CIoU ------------------------------
    w1 = b1x2 - b1x1
    h1 = b1y2 - b1y1 + _EPS
    w2 = b2x2 - b2x1
    h2 = b2y2 - b2y1 + _EPS

    inter = (jnp.maximum(jnp.minimum(b1x2, b2x2) - jnp.maximum(b1x1, b2x1), 0.0)
             * jnp.maximum(jnp.minimum(b1y2, b2y2) - jnp.maximum(b1y1, b2y1), 0.0))
    union = w1 * h1 + w2 * h2 - inter + _EPS
    iou = inter * pl.reciprocal(union, approx=True)

    cw = jnp.maximum(b1x2, b2x2) - jnp.minimum(b1x1, b2x1)
    ch = jnp.maximum(b1y2, b2y2) - jnp.minimum(b1y1, b2y1)
    c2 = cw * cw + ch * ch + _EPS
    rho2 = ((b2x1 + b2x2 - b1x1 - b1x2) ** 2 + (b2y1 + b2y2 - b1y1 - b1y2) ** 2) * 0.25
    v = (4.0 / (math.pi ** 2)) * (_atan_pos(w2 / h2) - _atan_pos(w1 / h1)) ** 2
    alpha = v * pl.reciprocal(v - iou + (1.0 + _EPS), approx=True)
    ciou = iou - (rho2 * pl.reciprocal(c2, approx=True) + v * alpha)

    iou_rows = (1.0 - ciou) * w                                   # (1, T)
    iou_out_ref[...] += jnp.sum(iou_rows, axis=1, keepdims=True)[None]

    # --------- DFL: bbox2dist(anchors, target_xyxy, REG_MAX-1) + soft CE ---------
    pd = pd_ref[...].astype(jnp.float32)                          # (4*REG_MAX, T)
    ax, ay = anc[0:1], anc[1:2]
    ltrb = (ax - b2x1, ay - b2y1, b2x2 - ax, b2y2 - ay)

    tile = pd.shape[1]
    idx = jax.lax.broadcasted_iota(jnp.int32, (REG_MAX, tile), 0)  # hoisted out of loop
    hi = float(REG_MAX - 1) - 0.01                                 # 14.99
    dfl_acc = jnp.zeros_like(w)
    for k in range(4):
        tgt = jnp.clip(ltrb[k], 0.0, hi)                           # (1, T)
        tl = tgt.astype(jnp.int32)                                 # floor (tgt >= 0)
        wl = tl.astype(jnp.float32) + 1.0 - tgt                    # left-bin weight
        wr = 1.0 - wl                                              # right-bin weight
        logits = pd[k * REG_MAX:(k + 1) * REG_MAX, :]              # (REG_MAX, T)
        mmax = jnp.max(logits, axis=0, keepdims=True)
        lse = mmax + jnp.log(jnp.sum(jnp.exp(logits - mmax), axis=0, keepdims=True))
        # Fused one-hot gather of both CE terms; since wl + wr == 1:
        #   wl*(lse - logit_l) + wr*(lse - logit_r) == lse - (wl*logit_l + wr*logit_r)
        sel = jnp.where(idx == tl, wl, 0.0) + jnp.where(idx == tl + 1, wr, 0.0)
        gathered = jnp.sum(sel * logits, axis=0, keepdims=True)
        dfl_acc = dfl_acc + (lse - gathered)
    dfl_rows = dfl_acc * 0.25 * w                                  # mean over 4 ltrb coords
    dfl_out_ref[...] += jnp.sum(dfl_rows, axis=1, keepdims=True)[None]


def _round_up(x, m):
    return (x + m - 1) // m * m


def bbox_loss(pred_dist, pred_bboxes, anchor_points, target_bboxes,
              target_scores, target_scores_sum, fg_mask, *, max_tile_m=8192):
    """JAX/Pallas equivalent of ultralytics BboxLoss.forward (CIoU + DFL).

    Returns (loss_iou, loss_dfl).
    """
    B, N = fg_mask.shape
    M = B * N
    f32 = jnp.float32

    # ---- channel-major (C, M): anchor axis on the 128-wide lane axis ----
    pd = pred_dist.reshape(M, 4 * REG_MAX).astype(jnp.bfloat16).T        # (64, M) bf16
    pb = pred_bboxes.reshape(M, 4).astype(f32).T                         # (4, M)
    tb = target_bboxes.reshape(M, 4).astype(f32).T                       # (4, M)
    anc_full = anchor_points if anchor_points.ndim == 3 else jnp.broadcast_to(
        anchor_points[None], (B, N, 2))
    anc = anc_full.reshape(M, 2).astype(f32).T                           # (2, M)
    weight = (target_scores.astype(f32).sum(-1) * fg_mask.astype(f32)).reshape(1, M)

    # ---- tile M; pad so each core gets an equal whole number of tiles ----
    tile_m = min(max_tile_m, _round_up(M, 128))
    n_tiles_total = -(-M // tile_m)
    tiles_per_core = -(-n_tiles_total // _N_CORES)
    m_pad = _N_CORES * tiles_per_core * tile_m

    def _pad(x):
        return jnp.pad(x, ((0, 0), (0, m_pad - x.shape[1]))) if m_pad > x.shape[1] else x

    pd, pb, tb, anc, weight = map(_pad, (pd, pb, tb, anc, weight))

    tpc = tiles_per_core
    m_idx = lambda c, t: (0, c * tpc + t)
    bytes_accessed = int(m_pad * (4 * REG_MAX * 2 + (4 + 4 + 2 + 1) * 4) + 2 * _N_CORES * 4)
    cost = pl.CostEstimate(flops=int(420 * m_pad),
                           transcendentals=int((4 * REG_MAX + 8) * m_pad),
                           bytes_accessed=bytes_accessed)

    iou_part, dfl_part = pl.pallas_call(
        _bbox_loss_kernel,
        grid=(_N_CORES, tpc),
        in_specs=[
            pl.BlockSpec((4 * REG_MAX, tile_m), m_idx),
            pl.BlockSpec((4, tile_m), m_idx),
            pl.BlockSpec((4, tile_m), m_idx),
            pl.BlockSpec((2, tile_m), m_idx),
            pl.BlockSpec((1, tile_m), m_idx),
        ],
        out_specs=(
            pl.BlockSpec((1, 1, 1), lambda c, t: (c, 0, 0)),
            pl.BlockSpec((1, 1, 1), lambda c, t: (c, 0, 0)),
        ),
        out_shape=(
            jax.ShapeDtypeStruct((_N_CORES, 1, 1), f32),
            jax.ShapeDtypeStruct((_N_CORES, 1, 1), f32),
        ),
        compiler_params=pltpu.CompilerParams(
            dimension_semantics=("parallel", "arbitrary"),
            vmem_limit_bytes=32 * 1024 * 1024),
        cost_estimate=cost,
    )(pd, pb, tb, anc, weight)

    tss = jnp.asarray(target_scores_sum, f32)
    loss_iou = jnp.sum(iou_part) / tss
    loss_dfl = jnp.sum(dfl_part) / tss
    # TODO(synk): the ARGS_PA-selected IoU variants (NWD/WIoU/SIoU/...) are dead code in
    # the reference (the import fails -> except branch), so only the live CIoU fallback
    # path and the DFL branch are implemented.
    return loss_iou, loss_dfl


def _reference(pred_dist, pred_bboxes, anchor_points, target_bboxes,
               target_scores, target_scores_sum, fg_mask):
    """Pure-JAX f32 reference mirroring the PyTorch forward (dense-masked)."""
    eps = 1e-7
    w = target_scores.sum(-1) * fg_mask.astype(jnp.float32)              # (B, N)
    b1x1, b1y1, b1x2, b1y2 = [pred_bboxes[..., i] for i in range(4)]
    b2x1, b2y1, b2x2, b2y2 = [target_bboxes[..., i] for i in range(4)]
    w1, h1 = b1x2 - b1x1, b1y2 - b1y1 + eps
    w2, h2 = b2x2 - b2x1, b2y2 - b2y1 + eps
    inter = (jnp.maximum(jnp.minimum(b1x2, b2x2) - jnp.maximum(b1x1, b2x1), 0.0)
             * jnp.maximum(jnp.minimum(b1y2, b2y2) - jnp.maximum(b1y1, b2y1), 0.0))
    union = w1 * h1 + w2 * h2 - inter + eps
    iou = inter / union
    cw = jnp.maximum(b1x2, b2x2) - jnp.minimum(b1x1, b2x1)
    ch = jnp.maximum(b1y2, b2y2) - jnp.minimum(b1y1, b2y1)
    c2 = cw ** 2 + ch ** 2 + eps
    rho2 = ((b2x1 + b2x2 - b1x1 - b1x2) ** 2 + (b2y1 + b2y2 - b1y1 - b1y2) ** 2) / 4.0
    v = (4.0 / math.pi ** 2) * (jnp.arctan(w2 / h2) - jnp.arctan(w1 / h1)) ** 2
    alpha = v / (v - iou + (1.0 + eps))
    ciou = iou - (rho2 / c2 + v * alpha)
    loss_iou = ((1.0 - ciou) * w).sum() / target_scores_sum

    anc = jnp.broadcast_to(anchor_points[None], (*fg_mask.shape, 2))
    ltrb = jnp.stack([anc[..., 0] - b2x1, anc[..., 1] - b2y1,
                      b2x2 - anc[..., 0], b2y2 - anc[..., 1]], axis=-1)
    tgt = jnp.clip(ltrb, 0.0, REG_MAX - 1 - 0.01)
    tl = jnp.floor(tgt).astype(jnp.int32)
    wl = (tl + 1).astype(jnp.float32) - tgt
    wr = 1.0 - wl
    logits = pred_dist.reshape(*tgt.shape, REG_MAX)
    lsm = jax.nn.log_softmax(logits, axis=-1)
    ce_l = -jnp.take_along_axis(lsm, tl[..., None], axis=-1)[..., 0]
    ce_r = -jnp.take_along_axis(lsm, (tl + 1)[..., None], axis=-1)[..., 0]
    dfl = (ce_l * wl + ce_r * wr).mean(-1)                               # (B, N)
    loss_dfl = (dfl * w).sum() / target_scores_sum
    return loss_iou, loss_dfl


if __name__ == "__main__":
    B, N, NC = 2, 64, 4                       # M = 128 anchors total
    key = jax.random.PRNGKey(0)
    ks = jax.random.split(key, 8)

    anchor_points = jax.random.uniform(ks[0], (N, 2), jnp.float32, 2.0, 14.0)
    t_xy = jax.random.uniform(ks[1], (B, N, 2), jnp.float32, 2.0, 14.0)
    t_wh = jax.random.uniform(ks[2], (B, N, 2), jnp.float32, 1.0, 6.0)
    target_bboxes = jnp.concatenate([t_xy - 0.5 * t_wh, t_xy + 0.5 * t_wh], axis=-1)
    p_xy = t_xy + 0.3 * jax.random.normal(ks[3], (B, N, 2), jnp.float32)
    p_wh = t_wh * jax.random.uniform(ks[4], (B, N, 2), jnp.float32, 0.8, 1.25)
    pred_bboxes = jnp.concatenate([p_xy - 0.5 * p_wh, p_xy + 0.5 * p_wh], axis=-1)
    pred_dist = jax.random.normal(ks[5], (B, N, 4 * REG_MAX), jnp.float32)
    target_scores = jax.nn.sigmoid(jax.random.normal(ks[6], (B, N, NC), jnp.float32))
    fg_mask = jax.random.uniform(ks[7], (B, N)) > 0.5
    target_scores_sum = jnp.maximum(target_scores.sum(), 1.0)

    loss_iou, loss_dfl = bbox_loss(pred_dist, pred_bboxes, anchor_points, target_bboxes,
                                   target_scores, target_scores_sum, fg_mask)
    jax.block_until_ready((loss_iou, loss_dfl))

    ref_iou, ref_dfl = _reference(pred_dist, pred_bboxes, anchor_points, target_bboxes,
                                  target_scores, target_scores_sum, fg_mask)
    for got, ref in ((loss_iou, ref_iou), (loss_dfl, ref_dfl)):
        got_f, ref_f = float(got), float(ref)
        assert abs(got_f - ref_f) <= 1e-3 + 2e-2 * abs(ref_f), (got_f, ref_f)
    print("KERNEL_OK")
</pallas_src>

<mosaic_0001>
module attributes {stable_mosaic.version = 11 : i64} {
  func.func @_bbox_loss_kernel(%arg0: i32, %arg1: i32, %arg2: memref<64x128xbf16, #tpu.memory_space<vmem>>, %arg3: memref<4x128xf32, #tpu.memory_space<vmem>>, %arg4: memref<4x128xf32, #tpu.memory_space<vmem>>, %arg5: memref<2x128xf32, #tpu.memory_space<vmem>>, %arg6: memref<1x128xf32, #tpu.memory_space<vmem>>, %arg7: memref<1x1x1xf32, #tpu.memory_space<vmem>>, %arg8: memref<1x1x1xf32, #tpu.memory_space<vmem>>) attributes {dimension_semantics = [#tpu.dimension_semantics<parallel>, #tpu.dimension_semantics<arbitrary>], iteration_bounds = array<i64: 2, 1>, scalar_prefetch = 0 : i64, scratch_operands = 0 : i64, tpu.core_type = #tpu.core_type<tc>, window_params = [{transform_indices = @transform_0, window_bounds = array<i64: 64, 128>}, {transform_indices = @transform_1, window_bounds = array<i64: 4, 128>}, {transform_indices = @transform_2, window_bounds = array<i64: 4, 128>}, {transform_indices = @transform_3, window_bounds = array<i64: 2, 128>}, {transform_indices = @transform_4, window_bounds = array<i64: 1, 128>}, {transform_indices = @transform_5, window_bounds = array<i64: 1, 1, 1>}, {transform_indices = @transform_6, window_bounds = array<i64: 1, 1, 1>}]} {
    %c0_i32 = arith.constant 0 : i32
    %0 = arith.cmpi eq, %arg1, %c0_i32 : i32
    %1 = arith.extui %0 : i1 to i32
    %c0_i32_0 = arith.constant 0 : i32
    %2 = arith.cmpi ne, %1, %c0_i32_0 : i32
    scf.if %2 {
      %cst_92 = arith.constant 0.000000e+00 : f32
      %322 = vector.broadcast %cst_92 : f32 to vector<1x1x1xf32>
      %c0_93 = arith.constant 0 : index
      %c0_94 = arith.constant 0 : index
      %c0_95 = arith.constant 0 : index
      %323 = vector.load %arg7[%c0_93, %c0_94, %c0_95] : memref<1x1x1xf32, #tpu.memory_space<vmem>>, vector<1x1x1xf32>
      tpu.vector_store %arg7[%c0_93, %c0_94, %c0_95], %322 {strides = array<i32>} : memref<1x1x1xf32, #tpu.memory_space<vmem>>, vector<1x1x1xf32>,
      %cst_96 = arith.constant 0.000000e+00 : f32
      %324 = vector.broadcast %cst_96 : f32 to vector<1x1x1xf32>
      %c0_97 = arith.constant 0 : index
      %c0_98 = arith.constant 0 : index
      %c0_99 = arith.constant 0 : index
      %325 = vector.load %arg8[%c0_97, %c0_98, %c0_99] : memref<1x1x1xf32, #tpu.memory_space<vmem>>, vector<1x1x1xf32>
      tpu.vector_store %arg8[%c0_97, %c0_98, %c0_99], %324 {strides = array<i32>} : memref<1x1x1xf32, #tpu.memory_space<vmem>>, vector<1x1x1xf32>,
    } else {
    }
    %c0 = arith.constant 0 : index
    %c0_1 = arith.constant 0 : index
    %3 = vector.load %arg3[%c0, %c0_1] : memref<4x128xf32, #tpu.memory_space<vmem>>, vector<4x128xf32>
    %c0_2 = arith.constant 0 : index
    %c0_3 = arith.constant 0 : index
    %4 = vector.load %arg4[%c0_2, %c0_3] : memref<4x128xf32, #tpu.memory_space<vmem>>, vector<4x128xf32>
    %c0_4 = arith.constant 0 : index
    %c0_5 = arith.constant 0 : index
    %5 = vector.load %arg5[%c0_4, %c0_5] : memref<2x128xf32, #tpu.memory_space<vmem>>, vector<2x128xf32>
    %c0_6 = arith.constant 0 : index
    %c0_7 = arith.constant 0 : index
    %6 = vector.load %arg6[%c0_6, %c0_7] : memref<1x128xf32, #tpu.memory_space<vmem>>, vector<1x128xf32>
    %7 = vector.extract_strided_slice %3 {offsets = [0, 0], sizes = [1, 128], strides = [1, 1]} : vector<4x128xf32> to vector<1x128xf32>
    %8 = vector.extract_strided_slice %3 {offsets = [1, 0], sizes = [1, 128], strides = [1, 1]} : vector<4x128xf32> to vector<1x128xf32>
    %9 = vector.extract_strided_slice %3 {offsets = [2, 0], sizes = [1, 128], strides = [1, 1]} : vector<4x128xf32> to vector<1x128xf32>
    %10 = vector.extract_strided_slice %3 {offsets = [3, 0], sizes = [1, 128], strides = [1, 1]} : vector<4x128xf32> to vector<1x128xf32>
    %11 = vector.extract_strided_slice %4 {offsets = [0, 0], sizes = [1, 128], strides = [1, 1]} : vector<4x128xf32> to vector<1x128xf32>
    %12 = vector.extract_strided_slice %4 {offsets = [1, 0], sizes = [1, 128], strides = [1, 1]} : vector<4x128xf32> to vector<1x128xf32>
    %13 = vector.extract_strided_slice %4 {offsets = [2, 0], sizes = [1, 128], strides = [1, 1]} : vector<4x128xf32> to vector<1x128xf32>
    %14 = vector.extract_strided_slice %4 {offsets = [3, 0], sizes = [1, 128], strides = [1, 1]} : vector<4x128xf32> to vector<1x128xf32>
    %15 = arith.subf %9, %7 : vector<1x128xf32>
    %16 = arith.subf %10, %8 : vector<1x128xf32>
    %cst = arith.constant 1.000000e-07 : f32
    %17 = vector.broadcast %cst : f32 to vector<1x128xf32>
    %18 = arith.addf %16, %17 : vector<1x128xf32>
    %19 = arith.subf %13, %11 : vector<1x128xf32>
    %20 = arith.subf %14, %12 : vector<1x128xf32>
    %cst_8 = arith.constant 1.000000e-07 : f32
    %21 = vector.broadcast %cst_8 : f32 to vector<1x128xf32>
    %22 = arith.addf %20, %21 : vector<1x128xf32>
    %23 = arith.minimumf %9, %13 : vector<1x128xf32>
    %24 = arith.maximumf %7, %11 : vector<1x128xf32>
    %25 = arith.subf %23, %24 : vector<1x128xf32>
    %cst_9 = arith.constant 0.000000e+00 : f32
    %26 = vector.broadcast %cst_9 : f32 to vector<1x128xf32>
    %27 = arith.maximumf %25, %26 : vector<1x128xf32>
    %28 = arith.minimumf %10, %14 : vector<1x128xf32>
    %29 = arith.maximumf %8, %12 : vector<1x128xf32>
    %30 = arith.subf %28, %29 : vector<1x128xf32>
    %cst_10 = arith.constant 0.000000e+00 : f32
    %31 = vector.broadcast %cst_10 : f32 to vector<1x128xf32>
    %32 = arith.maximumf %30, %31 : vector<1x128xf32>
    %33 = arith.mulf %27, %32 : vector<1x128xf32>
    %34 = arith.mulf %15, %18 : vector<1x128xf32>
    %35 = arith.mulf %19, %22 : vector<1x128xf32>
    %36 = arith.addf %34, %35 : vector<1x128xf32>
    %37 = arith.subf %36, %33 : vector<1x128xf32>
    %cst_11 = arith.constant 1.000000e-07 : f32
    %38 = vector.broadcast %cst_11 : f32 to vector<1x128xf32>
    %39 = arith.addf %37, %38 : vector<1x128xf32>
    %40 = tpu.reciprocal %39 {approx = true} : vector<1x128xf32> -> vector<1x128xf32>
    %41 = arith.mulf %33, %40 : vector<1x128xf32>
    %42 = arith.maximumf %9, %13 : vector<1x128xf32>
    %43 = arith.minimumf %7, %11 : vector<1x128xf32>
    %44 = arith.subf %42, %43 : vector<1x128xf32>
    %45 = arith.maximumf %10, %14 : vector<1x128xf32>
    %46 = arith.minimumf %8, %12 : vector<1x128xf32>
    %47 = arith.subf %45, %46 : vector<1x128xf32>
    %48 = arith.mulf %44, %44 : vector<1x128xf32>
    %49 = arith.mulf %47, %47 : vector<1x128xf32>
    %50 = arith.addf %48, %49 : vector<1x128xf32>
    %cst_12 = arith.constant 1.000000e-07 : f32
    %51 = vector.broadcast %cst_12 : f32 to vector<1x128xf32>
    %52 = arith.addf %50, %51 : vector<1x128xf32>
    %53 = arith.addf %11, %13 : vector<1x128xf32>
    %54 = arith.subf %53, %7 : vector<1x128xf32>
    %55 = arith.subf %54, %9 : vector<1x128xf32>
    %56 = arith.mulf %55, %55 : vector<1x128xf32>
    %57 = arith.addf %12, %14 : vector<1x128xf32>
    %58 = arith.subf %57, %8 : vector<1x128xf32>
    %59 = arith.subf %58, %10 : vector<1x128xf32>
    %60 = arith.mulf %59, %59 : vector<1x128xf32>
    %61 = arith.addf %56, %60 : vector<1x128xf32>
    %cst_13 = arith.constant 2.500000e-01 : f32
    %62 = vector.broadcast %cst_13 : f32 to vector<1x128xf32>
    %63 = arith.mulf %61, %62 : vector<1x128xf32>
    %64 = arith.divf %19, %22 : vector<1x128xf32>
    %cst_14 = arith.constant 1.000000e+00 : f32
    %65 = vector.broadcast %cst_14 : f32 to vector<1x128xf32>
    %66 = arith.cmpf ogt, %64, %65 : vector<1x128xf32>
    %cst_15 = arith.constant 9.99999996E-13 : f32
    %67 = vector.broadcast %cst_15 : f32 to vector<1x128xf32>
    %68 = arith.maximumf %64, %67 : vector<1x128xf32>
    %cst_16 = arith.constant 1.000000e+00 : f32
    %69 = vector.broadcast %cst_16 : f32 to vector<1x128xf32>
    %70 = arith.divf %69, %68 : vector<1x128xf32>
    %71 = arith.select %66, %70, %64 : vector<1x128xi1>, vector<1x128xf32>
    %72 = arith.mulf %71, %71 : vector<1x128xf32>
    %cst_17 = arith.constant 2.083510e-02 : f32
    %73 = vector.broadcast %cst_17 : f32 to vector<1x128xf32>
    %74 = arith.mulf %72, %73 : vector<1x128xf32>
    %cst_18 = arith.constant -8.513300e-02 : f32
    %75 = vector.broadcast %cst_18 : f32 to vector<1x128xf32>
    %76 = arith.addf %75, %74 : vector<1x128xf32>
    %77 = arith.mulf %72, %76 : vector<1x128xf32>
    %cst_19 = arith.constant 1.801410e-01 : f32
    %78 = vector.broadcast %cst_19 : f32 to vector<1x128xf32>
    %79 = arith.addf %78, %77 : vector<1x128xf32>
    %80 = arith.mulf %72, %79 : vector<1x128xf32>
    %cst_20 = arith.constant -0.330299497 : f32
    %81 = vector.broadcast %cst_20 : f32 to vector<1x128xf32>
    %82 = arith.addf %81, %80 : vector<1x128xf32>
    %83 = arith.mulf %72, %82 : vector<1x128xf32>
    %cst_21 = arith.constant 9.998660e-01 : f32
    %84 = vector.broadcast %cst_21 : f32 to vector<1x128xf32>
    %85 = arith.addf %84, %83 : vector<1x128xf32>
    %86 = arith.mulf %71, %85 : vector<1x128xf32>
    %cst_22 = arith.constant 1.57079637 : f32
    %87 = vector.broadcast %cst_22 : f32 to vector<1x128xf32>
    %88 = arith.subf %87, %86 : vector<1x128xf32>
    %89 = arith.select %66, %88, %86 : vector<1x128xi1>, vector<1x128xf32>
    %90 = arith.divf %15, %18 : vector<1x128xf32>
    %cst_23 = arith.constant 1.000000e+00 : f32
    %91 = vector.broadcast %cst_23 : f32 to vector<1x128xf32>
    %92 = arith.cmpf ogt, %90, %91 : vector<1x128xf32>
    %cst_24 = arith.constant 9.99999996E-13 : f32
    %93 = vector.broadcast %cst_24 : f32 to vector<1x128xf32>
    %94 = arith.maximumf %90, %93 : vector<1x128xf32>
    %cst_25 = arith.constant 1.000000e+00 : f32
    %95 = vector.broadcast %cst_25 : f32 to vector<1x128xf32>
    %96 = arith.divf %95, %94 : vector<1x128xf32>
    %97 = arith.select %92, %96, %90 : vector<1x128xi1>, vector<1x128xf32>
    %98 = arith.mulf %97, %97 : vector<1x128xf32>
    %cst_26 = arith.constant 2.083510e-02 : f32
    %99 = vector.broadcast %cst_26 : f32 to vector<1x128xf32>
    %100 = arith.mulf %98, %99 : vector<1x128xf32>
    %cst_27 = arith.constant -8.513300e-02 : f32
    %101 = vector.broadcast %cst_27 : f32 to vector<1x128xf32>
    %102 = arith.addf %101, %100 : vector<1x128xf32>
    %103 = arith.mulf %98, %102 : vector<1x128xf32>
    %cst_28 = arith.constant 1.801410e-01 : f32
    %104 = vector.broadcast %cst_28 : f32 to vector<1x128xf32>
    %105 = arith.addf %104, %103 : vector<1x128xf32>
    %106 = arith.mulf %98, %105 : vector<1x128xf32>
    %cst_29 = arith.constant -0.330299497 : f32
    %107 = vector.broadcast %cst_29 : f32 to vector<1x128xf32>
    %108 = arith.addf %107, %106 : vector<1x128xf32>
    %109 = arith.mulf %98, %108 : vector<1x128xf32>
    %cst_30 = arith.constant 9.998660e-01 : f32
    %110 = vector.broadcast %cst_30 : f32 to vector<1x128xf32>
    %111 = arith.addf %110, %109 : vector<1x128xf32>
    %112 = arith.mulf %97, %111 : vector<1x128xf32>
    %cst_31 = arith.constant 1.57079637 : f32
    %113 = vector.broadcast %cst_31 : f32 to vector<1x128xf32>
    %114 = arith.subf %113, %112 : vector<1x128xf32>
    %115 = arith.select %92, %114, %112 : vector<1x128xi1>, vector<1x128xf32>
    %116 = arith.subf %89, %115 : vector<1x128xf32>
    %117 = arith.mulf %116, %116 : vector<1x128xf32>
    %cst_32 = arith.constant 0.405284733 : f32
    %118 = vector.broadcast %cst_32 : f32 to vector<1x128xf32>
    %119 = arith.mulf %118, %117 : vector<1x128xf32>
    %120 = arith.subf %119, %41 : vector<1x128xf32>
    %cst_33 = arith.constant 1.00000012 : f32
    %121 = vector.broadcast %cst_33 : f32 to vector<1x128xf32>
    %122 = arith.addf %120, %121 : vector<1x128xf32>
    %123 = tpu.reciprocal %122 {approx = true} : vector<1x128xf32> -> vector<1x128xf32>
    %124 = arith.mulf %119, %123 : vector<1x128xf32>
    %125 = tpu.reciprocal %52 {approx = true} : vector<1x128xf32> -> vector<1x128xf32>
    %126 = arith.mulf %63, %125 : vector<1x128xf32>
    %127 = arith.mulf %119, %124 : vector<1x128xf32>
    %128 = arith.addf %126, %127 : vector<1x128xf32>
    %129 = arith.subf %41, %128 : vector<1x128xf32>
    %cst_34 = arith.constant 1.000000e+00 : f32
    %130 = vector.broadcast %cst_34 : f32 to vector<1x128xf32>
    %131 = arith.subf %130, %129 : vector<1x128xf32>
    %132 = arith.mulf %131, %6 : vector<1x128xf32>
    %c0_35 = arith.constant 0 : index
    %c0_36 = arith.constant 0 : index
    %c0_37 = arith.constant 0 : index
    %133 = vector.load %arg7[%c0_35, %c0_36, %c0_37] : memref<1x1x1xf32, #tpu.memory_space<vmem>>, vector<1x1x1xf32>
    %cst_38 = arith.constant dense<0.000000e+00> : vector<1xf32>
    %134 = vector.multi_reduction <add>, %132, %cst_38 [1] : vector<1x128xf32> to vector<1xf32>
    %135 = vector.shape_cast %134 : vector<1xf32> to vector<1x1xf32>
    %136 = vector.shape_cast %135 : vector<1x1xf32> to vector<1x1x1xf32>
    %137 = arith.addf %133, %136 : vector<1x1x1xf32>
    %c0_39 = arith.constant 0 : index
    %c0_40 = arith.constant 0 : index
    %c0_41 = arith.constant 0 : index
    %138 = vector.load %arg7[%c0_39, %c0_40, %c0_41] : memref<1x1x1xf32, #tpu.memory_space<vmem>>, vector<1x1x1xf32>
    tpu.vector_store %arg7[%c0_39, %c0_40, %c0_41], %137 {strides = array<i32>} : memref<1x1x1xf32, #tpu.memory_space<vmem>>, vector<1x1x1xf32>,
    %c0_42 = arith.constant 0 : index
    %c0_43 = arith.constant 0 : index
    %139 = vector.load %arg2[%c0_42, %c0_43] : memref<64x128xbf16, #tpu.memory_space<vmem>>, vector<64x128xbf16>
    %140 = arith.extf %139 : vector<64x128xbf16> to vector<64x128xf32>
    %141 = vector.extract_strided_slice %5 {offsets = [0, 0], sizes = [1, 128], strides = [1, 1]} : vector<2x128xf32> to vector<1x128xf32>
    %142 = vector.extract_strided_slice %5 {offsets = [1, 0], sizes = [1, 128], strides = [1, 1]} : vector<2x128xf32> to vector<1x128xf32>
    %143 = arith.subf %141, %11 : vector<1x128xf32>
    %144 = arith.subf %142, %12 : vector<1x128xf32>
    %145 = arith.subf %13, %141 : vector<1x128xf32>
    %146 = arith.subf %14, %142 : vector<1x128xf32>
    %147 = tpu.iota {dimensions = array<i32: 0>} : vector<16x128xi32>
    %cst_44 = arith.constant 0.000000e+00 : f32
    %148 = vector.broadcast %cst_44 : f32 to vector<1x128xf32>
    %cst_45 = arith.constant 0.000000e+00 : f32
    %cst_46 = arith.constant 1.499000e+01 : f32
    %149 = vector.broadcast %cst_45 : f32 to vector<1x128xf32>
    %150 = arith.maximumf %149, %143 : vector<1x128xf32>
    %151 = vector.broadcast %cst_46 : f32 to vector<1x128xf32>
    %152 = arith.minimumf %151, %150 : vector<1x128xf32>
    %153 = arith.fptosi %152 : vector<1x128xf32> to vector<1x128xi32>
    %154 = arith.sitofp %153 : vector<1x128xi32> to vector<1x128xf32>
    %cst_47 = arith.constant 1.000000e+00 : f32
    %155 = vector.broadcast %cst_47 : f32 to vector<1x128xf32>
    %156 = arith.addf %154, %155 : vector<1x128xf32>
    %157 = arith.subf %156, %152 : vector<1x128xf32>
    %cst_48 = arith.constant 1.000000e+00 : f32
    %158 = vector.broadcast %cst_48 : f32 to vector<1x128xf32>
    %159 = arith.subf %158, %157 : vector<1x128xf32>
    %160 = vector.extract_strided_slice %140 {offsets = [0, 0], sizes = [16, 128], strides = [1, 1]} : vector<64x128xf32> to vector<16x128xf32>
    %cst_49 = arith.constant dense<0xFF800000> : vector<128xf32>
    %161 = vector.multi_reduction <maximumf>, %160, %cst_49 [0] : vector<16x128xf32> to vector<128xf32>
    %162 = vector.shape_cast %161 : vector<128xf32> to vector<1x128xf32>
    %163 = vector.broadcast %162 : vector<1x128xf32> to vector<16x128xf32>
    %164 = arith.subf %160, %163 : vector<16x128xf32>
    %165 = math.exp %164 : vector<16x128xf32>
    %cst_50 = arith.constant dense<0.000000e+00> : vector<128xf32>
    %166 = vector.multi_reduction <add>, %165, %cst_50 [0] : vector<16x128xf32> to vector<128xf32>
    %167 = vector.shape_cast %166 : vector<128xf32> to vector<1x128xf32>
    %168 = math.log %167 : vector<1x128xf32>
    %169 = arith.addf %162, %168 : vector<1x128xf32>
    %170 = vector.broadcast %153 : vector<1x128xi32> to vector<16x128xi32>
    %171 = arith.cmpi eq, %147, %170 : vector<16x128xi32>
    %cst_51 = arith.constant 0.000000e+00 : f32
    %172 = vector.shape_cast %157 : vector<1x128xf32> to vector<1x128xf32>
    %173 = vector.broadcast %172 : vector<1x128xf32> to vector<16x128xf32>
    %174 = vector.broadcast %cst_51 : f32 to vector<16x128xf32>
    %175 = arith.select %171, %173, %174 : vector<16x128xi1>, vector<16x128xf32>
    %c1_i32 = arith.constant 1 : i32
    %176 = vector.broadcast %c1_i32 : i32 to vector<1x128xi32>
    %177 = arith.addi %153, %176 : vector<1x128xi32>
    %178 = vector.broadcast %177 : vector<1x128xi32> to vector<16x128xi32>
    %179 = arith.cmpi eq, %147, %178 : vector<16x128xi32>
    %cst_52 = arith.constant 0.000000e+00 : f32
    %180 = vector.shape_cast %159 : vector<1x128xf32> to vector<1x128xf32>
    %181 = vector.broadcast %180 : vector<1x128xf32> to vector<16x128xf32>
    %182 = vector.broadcast %cst_52 : f32 to vector<16x128xf32>
    %183 = arith.select %179, %181, %182 : vector<16x128xi1>, vector<16x128xf32>
    %184 = arith.addf %175, %183 : vector<16x128xf32>
    %185 = arith.mulf %184, %160 : vector<16x128xf32>
    %cst_53 = arith.constant dense<0.000000e+00> : vector<128xf32>
    %186 = vector.multi_reduction <add>, %185, %cst_53 [0] : vector<16x128xf32> to vector<128xf32>
    %187 = vector.shape_cast %186 : vector<128xf32> to vector<1x128xf32>
    %188 = arith.subf %169, %187 : vector<1x128xf32>
    %189 = arith.addf %148, %188 : vector<1x128xf32>
    %cst_54 = arith.constant 0.000000e+00 : f32
    %cst_55 = arith.constant 1.499000e+01 : f32
    %190 = vector.broadcast %cst_54 : f32 to vector<1x128xf32>
    %191 = arith.maximumf %190, %144 : vector<1x128xf32>
    %192 = vector.broadcast %cst_55 : f32 to vector<1x128xf32>
    %193 = arith.minimumf %192, %191 : vector<1x128xf32>
    %194 = arith.fptosi %193 : vector<1x128xf32> to vector<1x128xi32>
    %195 = arith.sitofp %194 : vector<1x128xi32> to vector<1x128xf32>
    %cst_56 = arith.constant 1.000000e+00 : f32
    %196 = vector.broadcast %cst_56 : f32 to vector<1x128xf32>
    %197 = arith.addf %195, %196 : vector<1x128xf32>
    %198 = arith.subf %197, %193 : vector<1x128xf32>
    %cst_57 = arith.constant 1.000000e+00 : f32
    %199 = vector.broadcast %cst_57 : f32 to vector<1x128xf32>
    %200 = arith.subf %199, %198 : vector<1x128xf32>
    %201 = vector.extract_strided_slice %140 {offsets = [16, 0], sizes = [16, 128], strides = [1, 1]} : vector<64x128xf32> to vector<16x128xf32>
    %cst_58 = arith.constant dense<0xFF800000> : vector<128xf32>
    %202 = vector.multi_reduction <maximumf>, %201, %cst_58 [0] : vector<16x128xf32> to vector<128xf32>
    %203 = vector.shape_cast %202 : vector<128xf32> to vector<1x128xf32>
    %204 = vector.broadcast %203 : vector<1x128xf32> to vector<16x128xf32>
    %205 = arith.subf %201, %204 : vector<16x128xf32>
    %206 = math.exp %205 : vector<16x128xf32>
    %cst_59 = arith.constant dense<0.000000e+00> : vector<128xf32>
    %207 = vector.multi_reduction <add>, %206, %cst_59 [0] : vector<16x128xf32> to vector<128xf32>
    %208 = vector.shape_cast %207 : vector<128xf32> to vector<1x128xf32>
    %209 = math.log %208 : vector<1x128xf32>
    %210 = arith.addf %203, %209 : vector<1x128xf32>
    %211 = vector.broadcast %194 : vector<1x128xi32> to vector<16x128xi32>
    %212 = arith.cmpi eq, %147, %211 : vector<16x128xi32>
    %cst_60 = arith.constant 0.000000e+00 : f32
    %213 = vector.shape_cast %198 : vector<1x128xf32> to vector<1x128xf32>
    %214 = vector.broadcast %213 : vector<1x128xf32> to vector<16x128xf32>
    %215 = vector.broadcast %cst_60 : f32 to vector<16x128xf32>
    %216 = arith.select %212, %214, %215 : vector<16x128xi1>, vector<16x128xf32>
    %c1_i32_61 = arith.constant 1 : i32
    %217 = vector.broadcast %c1_i32_61 : i32 to vector<1x128xi32>
    %218 = arith.addi %194, %217 : vector<1x128xi32>
    %219 = vector.broadcast %218 : vector<1x128xi32> to vector<16x128xi32>
    %220 = arith.cmpi eq, %147, %219 : vector<16x128xi32>
    %cst_62 = arith.constant 0.000000e+00 : f32
    %221 = vector.shape_cast %200 : vector<1x128xf32> to vector<1x128xf32>
    %222 = vector.broadcast %221 : vector<1x128xf32> to vector<16x128xf32>
    %223 = vector.broadcast %cst_62 : f32 to vector<16x128xf32>
    %224 = arith.select %220, %222, %223 : vector<16x128xi1>, vector<16x128xf32>
    %225 = arith.addf %216, %224 : vector<16x128xf32>
    %226 = arith.mulf %225, %201 : vector<16x128xf32>
    %cst_63 = arith.constant dense<0.000000e+00> : vector<128xf32>
    %227 = vector.multi_reduction <add>, %226, %cst_63 [0] : vector<16x128xf32> to vector<128xf32>
    %228 = vector.shape_cast %227 : vector<128xf32> to vector<1x128xf32>
    %229 = arith.subf %210, %228 : vector<1x128xf32>
    %230 = arith.addf %189, %229 : vector<1x128xf32>
    %cst_64 = arith.constant 0.000000e+00 : f32
    %cst_65 = arith.constant 1.499000e+01 : f32
    %231 = vector.broadcast %cst_64 : f32 to vector<1x128xf32>
    %232 = arith.maximumf %231, %145 : vector<1x128xf32>
    %233 = vector.broadcast %cst_65 : f32 to vector<1x128xf32>
    %234 = arith.minimumf %233, %232 : vector<1x128xf32>
    %235 = arith.fptosi %234 : vector<1x128xf32> to vector<1x128xi32>
    %236 = arith.sitofp %235 : vector<1x128xi32> to vector<1x128xf32>
    %cst_66 = arith.constant 1.000000e+00 : f32
    %237 = vector.broadcast %cst_66 : f32 to vector<1x128xf32>
    %238 = arith.addf %236, %237 : vector<1x128xf32>
    %239 = arith.subf %238, %234 : vector<1x128xf32>
    %cst_67 = arith.constant 1.000000e+00 : f32
    %240 = vector.broadcast %cst_67 : f32 to vector<1x128xf32>
    %241 = arith.subf %240, %239 : vector<1x128xf32>
    %242 = vector.extract_strided_slice %140 {offsets = [32, 0], sizes = [16, 128], strides = [1, 1]} : vector<64x128xf32> to vector<16x128xf32>
    %cst_68 = arith.constant dense<0xFF800000> : vector<128xf32>
    %243 = vector.multi_reduction <maximumf>, %242, %cst_68 [0] : vector<16x128xf32> to vector<128xf32>
    %244 = vector.shape_cast %243 : vector<128xf32> to vector<1x128xf32>
    %245 = vector.broadcast %244 : vector<1x128xf32> to vector<16x128xf32>
    %246 = arith.subf %242, %245 : vector<16x128xf32>
    %247 = math.exp %246 : vector<16x128xf32>
    %cst_69 = arith.constant dense<0.000000e+00> : vector<128xf32>
    %248 = vector.multi_reduction <add>, %247, %cst_69 [0] : vector<16x128xf32> to vector<128xf32>
    %249 = vector.shape_cast %248 : vector<128xf32> to vector<1x128xf32>
    %250 = math.log %249 : vector<1x128xf32>
    %251 = arith.addf %244, %250 : vector<1x128xf32>
    %252 = vector.broadcast %235 : vector<1x128xi32> to vector<16x128xi32>
    %253 = arith.cmpi eq, %147, %252 : vector<16x128xi32>
    %cst_70 = arith.constant 0.000000e+00 : f32
    %254 = vector.shape_cast %239 : vector<1x128xf32> to vector<1x128xf32>
    %255 = vector.broadcast %254 : vector<1x128xf32> to vector<16x128xf32>
    %256 = vector.broadcast %cst_70 : f32 to vector<16x128xf32>
    %257 = arith.select %253, %255, %256 : vector<16x128xi1>, vector<16x128xf32>
    %c1_i32_71 = arith.constant 1 : i32
    %258 = vector.broadcast %c1_i32_71 : i32 to vector<1x128xi32>
    %259 = arith.addi %235, %258 : vector<1x128xi32>
    %260 = vector.broadcast %259 : vector<1x128xi32> to vector<16x128xi32>
    %261 = arith.cmpi eq, %147, %260 : vector<16x128xi32>
    %cst_72 = arith.constant 0.000000e+00 : f32
    %262 = vector.shape_cast %241 : vector<1x128xf32> to vector<1x128xf32>
    %263 = vector.broadcast %262 : vector<1x128xf32> to vector<16x128xf32>
    %264 = vector.broadcast %cst_72 : f32 to vector<16x128xf32>
    %265 = arith.select %261, %263, %264 : vector<16x128xi1>, vector<16x128xf32>
    %266 = arith.addf %257, %265 : vector<16x128xf32>
    %267 = arith.mulf %266, %242 : vector<16x128xf32>
    %cst_73 = arith.constant dense<0.000000e+00> : vector<128xf32>
    %268 = vector.multi_reduction <add>, %267, %cst_73 [0] : vector<16x128xf32> to vector<128xf32>
    %269 = vector.shape_cast %268 : vector<128xf32> to vector<1x128xf32>
    %270 = arith.subf %251, %269 : vector<1x128xf32>
    %271 = arith.addf %230, %270 : vector<1x128xf32>
    %cst_74 = arith.constant 0.000000e+00 : f32
    %cst_75 = arith.constant 1.499000e+01 : f32
    %272 = vector.broadcast %cst_74 : f32 to vector<1x128xf32>
    %273 = arith.maximumf %272, %146 : vector<1x128xf32>
    %274 = vector.broadcast %cst_75 : f32 to vector<1x128xf32>
    %275 = arith.minimumf %274, %273 : vector<1x128xf32>
    %276 = arith.fptosi %275 : vector<1x128xf32> to vector<1x128xi32>
    %277 = arith.sitofp %276 : vector<1x128xi32> to vector<1x128xf32>
    %cst_76 = arith.constant 1.000000e+00 : f32
    %278 = vector.broadcast %cst_76 : f32 to vector<1x128xf32>
    %279 = arith.addf %277, %278 : vector<1x128xf32>
    %280 = arith.subf %279, %275 : vector<1x128xf32>
    %cst_77 = arith.constant 1.000000e+00 : f32
    %281 = vector.broadcast %cst_77 : f32 to vector<1x128xf32>
    %282 = arith.subf %281, %280 : vector<1x128xf32>
    %283 = vector.extract_strided_slice %140 {offsets = [48, 0], sizes = [16, 128], strides = [1, 1]} : vector<64x128xf32> to vector<16x128xf32>
    %cst_78 = arith.constant dense<0xFF800000> : vector<128xf32>
    %284 = vector.multi_reduction <maximumf>, %283, %cst_78 [0] : vector<16x128xf32> to vector<128xf32>
    %285 = vector.shape_cast %284 : vector<128xf32> to vector<1x128xf32>
    %286 = vector.broadcast %285 : vector<1x128xf32> to vector<16x128xf32>
    %287 = arith.subf %283, %286 : vector<16x128xf32>
    %288 = math.exp %287 : vector<16x128xf32>
    %cst_79 = arith.constant dense<0.000000e+00> : vector<128xf32>
    %289 = vector.multi_reduction <add>, %288, %cst_79 [0] : vector<16x128xf32> to vector<128xf32>
    %290 = vector.shape_cast %289 : vector<128xf32> to vector<1x128xf32>
    %291 = math.log %290 : vector<1x128xf32>
    %292 = arith.addf %285, %291 : vector<1x128xf32>
    %293 = vector.broadcast %276 : vector<1x128xi32> to vector<16x128xi32>
    %294 = arith.cmpi eq, %147, %293 : vector<16x128xi32>
    %cst_80 = arith.constant 0.000000e+00 : f32
    %295 = vector.shape_cast %280 : vector<1x128xf32> to vector<1x128xf32>
    %296 = vector.broadcast %295 : vector<1x128xf32> to vector<16x128xf32>
    %297 = vector.broadcast %cst_80 : f32 to vector<16x128xf32>
    %298 = arith.select %294, %296, %297 : vector<16x128xi1>, vector<16x128xf32>
    %c1_i32_81 = arith.constant 1 : i32
    %299 = vector.broadcast %c1_i32_81 : i32 to vector<1x128xi32>
    %300 = arith.addi %276, %299 : vector<1x128xi32>
    %301 = vector.broadcast %300 : vector<1x128xi32> to vector<16x128xi32>
    %302 = arith.cmpi eq, %147, %301 : vector<16x128xi32>
    %cst_82 = arith.constant 0.000000e+00 : f32
    %303 = vector.shape_cast %282 : vector<1x128xf32> to vector<1x128xf32>
    %304 = vector.broadcast %303 : vector<1x128xf32> to vector<16x128xf32>
    %305 = vector.broadcast %cst_82 : f32 to vector<16x128xf32>
    %306 = arith.select %302, %304, %305 : vector<16x128xi1>, vector<16x128xf32>
    %307 = arith.addf %298, %306 : vector<16x128xf32>
    %308 = arith.mulf %307, %283 : vector<16x128xf32>
    %cst_83 = arith.constant dense<0.000000e+00> : vector<128xf32>
    %309 = vector.multi_reduction <add>, %308, %cst_83 [0] : vector<16x128xf32> to vector<128xf32>
    %310 = vector.shape_cast %309 : vector<128xf32> to vector<1x128xf32>
    %311 = arith.subf %292, %310 : vector<1x128xf32>
    %312 = arith.addf %271, %311 : vector<1x128xf32>
    %cst_84 = arith.constant 2.500000e-01 : f32
    %313 = vector.broadcast %cst_84 : f32 to vector<1x128xf32>
    %314 = arith.mulf %312, %313 : vector<1x128xf32>
    %315 = arith.mulf %314, %6 : vector<1x128xf32>
    %c0_85 = arith.constant 0 : index
    %c0_86 = arith.constant 0 : index
    %c0_87 = arith.constant 0 : index
    %316 = vector.load %arg8[%c0_85, %c0_86, %c0_87] : memref<1x1x1xf32, #tpu.memory_space<vmem>>, vector<1x1x1xf32>
    %cst_88 = arith.constant dense<0.000000e+00> : vector<1xf32>
    %317 = vector.multi_reduction <add>, %315, %cst_88 [1] : vector<1x128xf32> to vector<1xf32>
    %318 = vector.shape_cast %317 : vector<1xf32> to vector<1x1xf32>
    %319 = vector.shape_cast %318 : vector<1x1xf32> to vector<1x1x1xf32>
    %320 = arith.addf %316, %319 : vector<1x1x1xf32>
    %c0_89 = arith.constant 0 : index
    %c0_90 = arith.constant 0 : index
    %c0_91 = arith.constant 0 : index
    %321 = vector.load %arg8[%c0_89, %c0_90, %c0_91] : memref<1x1x1xf32, #tpu.memory_space<vmem>>, vector<1x1x1xf32>
    tpu.vector_store %arg8[%c0_89, %c0_90, %c0_91], %320 {strides = array<i32>} : memref<1x1x1xf32, #tpu.memory_space<vmem>>, vector<1x1x1xf32>,
    return
  }
  func.func @transform_0(%arg0: i32, %arg1: i32) -> (i32, i32) {
    %c1_i32 = arith.constant 1 : i32
    %0 = arith.muli %arg0, %c1_i32 : i32
    %1 = arith.addi %0, %arg1 : i32
    %c0_i32 = arith.constant 0 : i32
    %c0_i32_0 = arith.constant 0 : i32
    return %c0_i32, %1 : i32, i32
  }
  func.func @transform_1(%arg0: i32, %arg1: i32) -> (i32, i32) {
    %c1_i32 = arith.constant 1 : i32
    %0 = arith.muli %arg0, %c1_i32 : i32
    %1 = arith.addi %0, %arg1 : i32
    %c0_i32 = arith.constant 0 : i32
    %c0_i32_0 = arith.constant 0 : i32
    return %c0_i32, %1 : i32, i32
  }
  func.func @transform_2(%arg0: i32, %arg1: i32) -> (i32, i32) {
    %c1_i32 = arith.constant 1 : i32
    %0 = arith.muli %arg0, %c1_i32 : i32
    %1 = arith.addi %0, %arg1 : i32
    %c0_i32 = arith.constant 0 : i32
    %c0_i32_0 = arith.constant 0 : i32
    return %c0_i32, %1 : i32, i32
  }
  func.func @transform_3(%arg0: i32, %arg1: i32) -> (i32, i32) {
    %c1_i32 = arith.constant 1 : i32
    %0 = arith.muli %arg0, %c1_i32 : i32
    %1 = arith.addi %0, %arg1 : i32
    %c0_i32 = arith.constant 0 : i32
    %c0_i32_0 = arith.constant 0 : i32
    return %c0_i32, %1 : i32, i32
  }
  func.func @transform_4(%arg0: i32, %arg1: i32) -> (i32, i32) {
    %c1_i32 = arith.constant 1 : i32
    %0 = arith.muli %arg0, %c1_i32 : i32
    %1 = arith.addi %0, %arg1 : i32
    %c0_i32 = arith.constant 0 : i32
    %c0_i32_0 = arith.constant 0 : i32
    return %c0_i32, %1 : i32, i32
  }
  func.func @transform_5(%arg0: i32, %arg1: i32) -> (i32, i32, i32) {
    %c0_i32 = arith.constant 0 : i32
    %c0_i32_0 = arith.constant 0 : i32
    %c0_i32_1 = arith.constant 0 : i32
    return %arg0, %c0_i32, %c0_i32_0 : i32, i32, i32
  }
  func.func @transform_6(%arg0: i32, %arg1: i32) -> (i32, i32, i32) {
    %c0_i32 = arith.constant 0 : i32
    %c0_i32_0 = arith.constant 0 : i32
    %c0_i32_1 = arith.constant 0 : i32
    return %arg0, %c0_i32, %c0_i32_0 : i32, i32, i32
  }
}

</mosaic_0001>

<bundles_post_ra>
// kernel: tpu_custom_call.1
= control target key start
LH: loop header
LB: loop body
LE: loop exit
PB: predicated region body
PF: predicated region fallthrough
CT: control target
= control target key end

     0   :  { %s1798_s0 = inlined_call_operand.hbm [shape: bf16[64,256], index: 0, kind: input, shape index: {}]   ;;  %s1799_s1 = inlined_call_operand.hbm [shape: f32[4,256], index: 1, kind: input, shape index: {}]   ;;  %s1800_s2 = inlined_call_operand.hbm [shape: f32[4,256], index: 2, kind: input, shape index: {}]   ;;  %s1801_s3 = inlined_call_operand.vmem [shape: f32[2,256], index: 3, kind: input, shape index: {}]   ;;  %s1802_s4 = inlined_call_operand.vmem [shape: f32[1,256], index: 4, kind: input, shape index: {}]   ;;  %s1803_s5 = inlined_call_operand.vmem [shape: f32[2,1,1], index: 5, kind: output, shape index: {0}]   ;;  %s1804_s6 = inlined_call_operand.vmem [shape: f32[2,1,1], index: 6, kind: output, shape index: {1}]  }
   0x1   :  { %1811 = sst [smem:[#allocation11_spill]] %s1798_s0 }
   0x2   :  { %1812 = sst [smem:[#allocation12_spill]] %s1799_s1 }
   0x3   :  { %12 = vsyncpa [#allocation3], 0 }
   0x4   :  { %14 = vsyncpa [#allocation3 + $0x1], 0 }
   0x5   :  { %15 = vsyncpa [#allocation5], 0 }
   0x6   :  { %17 = vsyncpa [#allocation5 + $0x1], 0  ;;  %s1348_s21 = smov 0   ;;  %s1350_s22 = smov 0  }
   0x7   :  { %s1352_s23 = smov 0   ;;  %s1354_s24 = smov 0  }
   0x8   :  { %s1356_s25 = smov 0   ;;  %s1358_s26 = smov 0  }
   0x9 LB: > { %1813 = sst [smem:[#allocation9_spill]] %s1300_s25  ;;  %s1805_s27 = sadd.s32 4294967295, %s1304_s26   ;;  %s1304_s26 = sphi %s1358_s26, %s23_s26   ;;  %s1300_s25 = sphi %s1356_s25, %s1830_s25   ;;  %s1296_s24 = sphi %s1354_s24, %s1829_s24   ;;  %s1292_s23 = sphi %s1352_s23, %s1833_s23   ;;  %s1288_s22 = sphi %s1350_s22, %s1832_s22   ;;  %s1284_s21 = sphi %s1348_s21, %s1831_s21  }
   0xa   : > { %s35_s28 = sadd.s32 1, %s1300_s25  ;;  %s44_s29 = sadd.s32 1, %s1292_s23 }
   0xb   : > { %p37_p0 = scmp.ge.s32.totalorder %s35_s28, 2  ;;  %p51_p1 = scmp.ne.s32.totalorder %s1292_s23, %s1288_s22 }
   0xc   : > { %p52_p2 = scmp.eq.s32.totalorder %s1304_s26, 0  ;;  %p57_p4 = scmp.ne.s32.totalorder %s1288_s22, %s1284_s21 }
   0xd   : > { %s1835_s28 = smov (%p37_p0, %s35_s28), 0  ;;  %p58_p5 = scmp.eq.s32.totalorder %s1805_s27, 0 }
   0xe   : > { %1814 = sst [smem:[#allocation10_spill]] %s1835_s28  ;;  %p1384_p3 = por %p52_p2, %p51_p1 }
   0xf   : > { %s41_s7 = ssub.s32 %s1300_s25, %s1835_s28  ;;  %p1393_p7 = por %p58_p5, %p57_p4 }
  0x10   : > { %p42_p6 = scmp.eq.s32.totalorder %s41_s7, 0  ;;  %p1069_p8 = scmp.lt.s32.totalorder %s1304_s26, 2 }
  0x11   : > { %s1816_s8 = scalar_select %p1393_p7, 1, 0 }
  0x12   : > { %s1399_s9 = scalar_select %p42_p6, %s1292_s23, %s44_s29  }
  0x13   : > { %s1402_s10 = sand.u32 1, %s1292_s23   ;;  %s1405_s11 = sshll.u32 %s1300_s25, 6 }
  0x14   : > { %s1017_s12 = sshll.u32 %s1402_s10, 5  ;;  %s1817_s0 = sld [smem:[#allocation11_spill]] }
  0x15   : > { %s249_s16 = scalar_lea.vmem [#allocation2], %s1017_s12  ;;  %p1416_p9 = pnand %p1069_p8, %p1384_p3 }
  0x16   : > { %s256_s17 = sshll.u32 %s249_s16, 4  ;;  %s266_s19 = sand.u32 1, %s1304_s26   ;;  %s1420_s17 = int_to_ptr.vmem [resolvable:$true] %s256_s17 }
  0x17   : > { %s1818_s18 = scalar_select %p1416_p9, 1, 0 }
  0x18   : > { %s1806_s20 = sshll.u32 %s1402_s10, 2  ;;  %s1819_s1 = sld [smem:[#allocation12_spill]] }
  0x19   : > { %s270_s30 = scalar_lea.vmem [#allocation4], %s1806_s20  ;;  %s1436_s13 = scalar_lea.sflag [#allocation5], %s266_s19 }
  0x1a   : > { %s1412_s15 = scalar_lea.hbm %s1817_s0, %s1405_s11  ;;  %s278_s12 = sshll.u32 %s270_s30, 4  ;;  %s1433_s12 = int_to_ptr.vmem [resolvable:$true] %s278_s12 }
  0x1b   : > { %p1442_p13 = pneg %p1416_p9 }
  0x1e   : > { %s1428_s7 = scalar_lea.hbm %s1819_s1, %s1405_s11  ;;  %s1165_s30 = scalar_lea.hbm %s1819_s1, 128 }
  0x1f   : > { %s1160_s14 = scalar_lea.hbm %s1428_s7, 64  ;;  %p1166_p2 = scmp.lt.u32.totalorder %s1428_s7, %s1819_s1 }
  0x20   : > { %p1161_p12 = scmp.ne.s32.totalorder %s1428_s7, %s1160_s14  ;;  %p1167_p3 = scmp.lt.u32.totalorder %s1165_s30, %s1160_s14 }
  0x21   : > { %p1169_p5 = scmp.lt.u32.totalorder %s1160_s14, %s1428_s7 }
  0x22   : > { %p1163_p0 = pnand %p1442_p13, %p1161_p12  ;;  %p1168_p4 = por %p1167_p3, %p1166_p2 }
  0x24   : > { %p1164_p1 = pneg %p1163_p0  ;;  %p1170_p6 = por %p1169_p5, %p1168_p4 }
  0x26   : > { %p1171_p8 = pnand %p1170_p6, %p1164_p1 }
  0x28   : > { %1174 = shalt.err (!%p1171_p8)
}
  0x29   : > { %s1175_s19 = scalar_lea.vmem %s1433_s12, 64  ;;  %s1306_s21 = smov [#allocation4]  }
  0x2a   : > { %p1176_p12 = scmp.ne.s32.totalorder %s1433_s12, %s1175_s19  ;;  %s1180_s29 = sshll.u32 %s1306_s21, 4  ;;  %s1181_s29 = int_to_ptr.vmem [resolvable:$false] %s1180_s29 }
  0x2b   : > { %s1182_s27 = scalar_lea.vmem %s1181_s29, 128  ;;  %p1183_p11 = scmp.lt.s32.totalorder %s1433_s12, %s1181_s29 }
  0x2c   : > { %p1178_p0 = pnand %p1176_p12, %p1442_p13  ;;  %p1184_p7 = scmp.lt.s32.totalorder %s1182_s27, %s1175_s19 }
  0x2e   : > { %p1179_p10 = pneg %p1178_p0  ;;  %p1185_p2 = por %p1184_p7, %p1183_p11 }
  0x30   : > { %p1186_p3 = pnand %p1185_p2, %p1179_p10 }
  0x32   : > { %1189 = shalt.err (!%p1186_p3)
}
  0x33   : > { %1065 = dma.hbm_to_vmem [thread:$0]  (!%p1416_p9), %s1428_s7, 64, %s1433_s12, %s1436_s13  }
  0x34   : > { %p1821_p1 = scmp.lt.s32.totalorder %s1304_s26, 3  ;;  %p1822_p4 = scmp.ge.s32.totalorder %s1304_s26, 1 }
  0x35   : > { %s246_s14 = scalar_lea.sflag [#allocation3], %s1402_s10  ;;  %s1190_s30 = scalar_lea.hbm %s1412_s15, 512 }
  0x36   : > { %p1470_p5 = pnand %p1822_p4, %p1821_p1  ;;  %p1191_p7 = scmp.ne.s32.totalorder %s1412_s15, %s1190_s30 }
  0x37   : > { %s1195_s29 = scalar_lea.hbm %s1817_s0, 1024  ;;  %p1196_p6 = scmp.lt.u32.totalorder %s1412_s15, %s1817_s0 }
  0x38   : > { %s1823_s20 = scalar_select %p1470_p5, 1, 0 }
  0x39   : > { %p1193_p10 = pnand %p1191_p7, %p1442_p13  ;;  %p1197_p8 = scmp.lt.u32.totalorder %s1195_s29, %s1190_s30 }
  0x3a   : > { %p1199_p0 = scmp.lt.u32.totalorder %s1190_s30, %s1412_s15 }
  0x3b   : > { %p1194_p11 = pneg %p1193_p10  ;;  %p1198_p12 = por %p1197_p8, %p1196_p6 }
  0x3d   : > { %p1200_p2 = por %p1199_p0, %p1198_p12 }
  0x3f   : > { %p1201_p3 = pnand %p1200_p2, %p1194_p11 }
  0x41   : > { %1204 = shalt.err (!%p1201_p3)
}
  0x42   : > { %s1205_s7 = scalar_lea.vmem %s1420_s17, 512  ;;  %s1307_s12 = smov [#allocation2]  }
  0x43   : > { %p1206_p1 = scmp.ne.s32.totalorder %s1420_s17, %s1205_s7  ;;  %s1210_s19 = sshll.u32 %s1307_s12, 4  ;;  %s1211_s19 = int_to_ptr.vmem [resolvable:$false] %s1210_s19 }
  0x44   : > { %s1212_s1 = scalar_lea.vmem %s1211_s19, 1024  ;;  %p1213_p10 = scmp.lt.s32.totalorder %s1420_s17, %s1211_s19 }
  0x45   : > { %p1208_p4 = pnand %p1206_p1, %p1442_p13  ;;  %p1214_p5 = scmp.lt.s32.totalorder %s1212_s1, %s1205_s7 }
  0x47   : > { %p1209_p7 = pneg %p1208_p4  ;;  %p1215_p6 = por %p1214_p5, %p1213_p10 }
  0x49   : > { %p1216_p8 = pnand %p1215_p6, %p1209_p7 }
  0x4b   : > { %1219 = shalt.err (!%p1216_p8)
}
  0x4c   : > { %s1308_s30 = smov 128   ;;  %s1309_s21 = smov 64  }
  0x4d   : > { %s1310_s29 = smov 4   ;;  %s1502_s7 = scalar_lea.hbm %s1800_s2, %s1405_s11 }
  0x4e   : > { %1062 = dma.hbm_to_vmem [thread:$0]  (!%p1416_p9), %s1412_s15, 512, %s1420_s17, %s246_s14, %s1308_s30, %s1309_s21, %s1310_s29  }
  0x4f   : > { %s1824_s19 = sshll.u32 %s1402_s10, 2  ;;  %s1220_s28 = scalar_lea.hbm %s1502_s7, 64 }
  0x50   : > { %s289_s1 = scalar_lea.vmem [#allocation6], %s1824_s19  ;;  %p1221_p5 = scmp.ne.s32.totalorder %s1502_s7, %s1220_s28 }
  0x51   : > { %s297_s0 = sshll.u32 %s289_s1, 4  ;;  %s1225_s17 = scalar_lea.hbm %s1800_s2, 128  ;;  %s298_s0 = int_to_ptr.vmem [resolvable:$true] %s297_s0 }
  0x52   : > { %p1223_p11 = pnand %p1221_p5, %p1442_p13  ;;  %p1226_p0 = scmp.lt.u32.totalorder %s1502_s7, %s1800_s2 }
  0x53   : > { %p1227_p2 = scmp.lt.u32.totalorder %s1225_s17, %s1220_s28  ;;  %p1229_p1 = scmp.lt.u32.totalorder %s1220_s28, %s1502_s7 }
  0x54   : > { %p1224_p12 = pneg %p1223_p11 }
  0x55   : > { %p1228_p3 = por %p1227_p2, %p1226_p0 }
  0x57   : > { %p1230_p4 = por %p1229_p1, %p1228_p3 }
  0x59   : > { %p1231_p7 = pnand %p1230_p4, %p1224_p12 }
  0x5b   : > { %1234 = shalt.err (!%p1231_p7)
}
  0x5c   : > { %s1235_s10 = scalar_lea.vmem %s298_s0, 64  ;;  %s1311_s30 = smov [#allocation6]  }
  0x5d   : > { %p1236_p10 = scmp.ne.s32.totalorder %s298_s0, %s1235_s10  ;;  %s1240_s21 = sshll.u32 %s1311_s30, 4  ;;  %s1241_s21 = int_to_ptr.vmem [resolvable:$false] %s1240_s21 }
  0x5e   : > { %s1242_s25 = scalar_lea.vmem %s1241_s21, 128  ;;  %p1243_p5 = scmp.lt.s32.totalorder %s298_s0, %s1241_s21 }
  0x5f   : > { %p1238_p6 = pnand %p1236_p10, %p1442_p13  ;;  %p1244_p11 = scmp.lt.s32.totalorder %s1242_s25, %s1235_s10 }
  0x61   : > { %p1239_p8 = pneg %p1238_p6  ;;  %p1245_p9 = por %p1244_p11, %p1243_p5 }
  0x63   : > { %p1246_p0 = pnand %p1245_p9, %p1239_p8 }
  0x65   : > { %1249 = shalt.err (!%p1246_p0)
}
  0x66   : > { %p1825_p2 = scmp.ne.s32.totalorder %s1818_s18, 0  ;;  %p1826_p12 = scmp.ne.s32.totalorder %s1823_s20, 0 }
  0x67   : > { %s325_s28 = sand.u32 (!%p1826_p12), 1, %s1288_s22   ;;  %p1827_p13 = scmp.ne.s32.totalorder (!%p1826_p12), %s1816_s8, 0 }
  0x68   : > { %1068 = dma.hbm_to_vmem [thread:$0]  (!%p1825_p2), %s1502_s7, 64, %s298_s0, %s1436_s13  }
  0x69   : > { %323 = sbr.rel (%p1826_p12) target bundleno = 383 (0x17f), region = 40  ;;  %s1024_s16 = sshll.u32 (!%p1826_p12), %s325_s28, 5 }
  0x6a   : > { %s326_s29 = scalar_lea.sflag (!%p1826_p12), [#allocation3], %s325_s28  ;;  %s1527_s27 = scalar_lea.vmem (!%p1826_p12), [#allocation2], %s1024_s16 }
  0x70   : > { %1275 = dma.done.wait (%p1827_p13), %s326_s29, 512  }
  0x71   : > { %1277 = vsyncadd (%p1827_p13), %s326_s29, 4294966784  ;;  %s1828_s18 = sadd.s32 4294967295, %s1304_s26   ;;  %s1025_s0 = sshll.u32 %s325_s28, 2 }
  0x72   : > { %s334_s12 = sand.u32 1, %s1828_s18   ;;  %s338_s20 = scalar_lea.vmem [#allocation4], %s1025_s0 }
  0x73   : > { %s335_s13 = scalar_lea.sflag [#allocation5], %s334_s12 }
  0x74   : > { %1279 = dma.done.wait (%p1827_p13), %s335_s13, 128  }
  0x75   : > { %1281 = vsyncadd (%p1827_p13), %s335_s13, 4294967168  ;;  %p400_p9 = scmp.lt.s32.totalorder %s1296_s24, 1  ;;  %v423_v0 = vld [vmem:[%s338_s20] sm:$0xf]  ;;  %s347_s19 = scalar_lea.vmem [#allocation6], %s1025_s0  ;;  %v1046_v14 = vld [vmem:[%s1527_s27 + $0x8] sm:$0xff]   ;;  %v545_v62 = vlaneseq }
  0x76   : > { %v1544_v1 = vld [vmem:[%s347_s19] sm:$0xf]  ;;  %v428_v2 = vrot.slane %v423_v0, 6  ;;  %v1031_v8 = vld [vmem:[%s1527_s27] sm:$0xff]   ;;  %v475_v10 = vrot.slane %v423_v0, 2  ;;  %v1563_v23 = vunpack.c.l.bf16 %v1046_v14  ;;  %v1565_v24 = vunpack.c.h.bf16 %v1046_v14  ;;  %v1047_v26 = vld [vmem:[%s1527_s27 + $0x10] sm:$0xff]  }
  0x77   : > { %s1837_s24 = smov (!%p400_p9, %s1296_s24), 1  ;;  %v433_v3 = vrot.slane %v1544_v1, 6  ;;  %v471_v4 = vrot.slane %v1544_v1, 2  ;;  %v438_v7 = vmax.f32 %v423_v0, %v1544_v1  ;;  %v437_v15 = vmin.f32 %v423_v0, %v1544_v1 }
  0x78   : > { %s1027_s7 = sshll.u32 %s1837_s24, 1  ;;  %v430_v5 = vsub.f32 %v423_v0, %v428_v2  ;;  %v1557_v17 = vunpack.c.l.bf16 %v1031_v8  ;;  %v1559_v21 = vunpack.c.h.bf16 %v1031_v8  ;;  %v657_v30 = vmax.f32 %v1563_v23, %v1565_v24  ;;  %s408_s11 = scalar_lea.vmem %s1802_s4, %s1837_s24 }
  0x79   : > { %s403_s8 = scalar_lea.vmem %s1801_s3, %s1027_s7  ;;  %v435_v6 = vsub.f32 %v1544_v1, %v433_v3  ;;  %v473_v9 = vadd.f32 %v471_v4, %v1544_v1  ;;  %v440_v18 = vrot.slane %v438_v7, 6  ;;  %v1575_v31 = vunpack.c.l.bf16 %v1047_v26  ;;  %s412_s21 = scalar_lea.vmem %s1803_s5, %s1837_s24 }
  0x7a   : > { %v425_v11 = vld [vmem:[%s403_s8] sm:$0x3]  ;;  %v431_v12 = vadd.f32 1e-07, %v430_v5  ;;  %v596_v29 = vmax.f32 %v1557_v17, %v1559_v21  ;;  %v1577_v32 = vunpack.c.h.bf16 %v1047_v26  ;;  %v658_v35 = vrot.slane %v657_v30, 4  ;;  %s415_s16 = scalar_lea.vmem %s1804_s6, %s1837_s24 }
  0x7b   : > { %v436_v13 = vadd.f32 1e-07, %v435_v6  ;;  %v474_v16 = vsub.f32 %v473_v9, %v423_v0  ;;  %v581_v25 = vsub.f32 %v425_v11, %v1544_v1  ;;  %v442_v28 = vsub.f32 %v437_v15, %v440_v18 }
  0x7c   : > { %v449_v19 = vrot.slane %v431_v12, 1  ;;  %v597_v34 = vrot.slane %v596_v29, 4  ;;  %v659_v38 = vmax.f32 %v657_v30, %v658_v35  ;;  %v724_v39 = vmax.f32 %v1575_v31, %v1577_v32 }
  0x7d   : > { %v453_v20 = vrot.slane %v436_v13, 1  ;;  %v1561_v22 = vsub.f32 %v474_v16, %v475_v10  ;;  %v1569_v27 = vmax.f32 %v581_v25, 0.0  ;;  %v443_v36 = vmax.f32 %v442_v28, 0.0 }
  0x7e   : > { %v598_v37 = vmax.f32 %v596_v29, %v597_v34  ;;  %v462_v40 = vrot.slane %v437_v15, 6  ;;  %v451_v44 = vmul.f32 %v449_v19, %v430_v5  ;;  %v660_v46 = vrot.slane %v659_v38, 2 }
  0x7f   : > { %1122 = vrcp.f32 %v453_v20  ;;  %v590_v33 = vmin.f32 %v1569_v27, 14.99  ;;  %v445_v43 = vrot.slane %v443_v36, 1  ;;  %v455_v45 = vmul.f32 %v453_v20, %v435_v6 }
  0x80   : > { %1124 = vrcp.f32 %v449_v19  ;;  %v599_v42 = vrot.slane %v598_v37, 2  ;;  %v583_v48 = vrot.slane %v425_v11, 6  ;;  %v661_v52 = vmax.f32 %v659_v38, %v660_v46 }
  0x81   : > { %v1049_v41 = vtrunc.f32 %v590_v33  ;;  %v725_v53 = vrot.slane %v724_v39, 4  ;;  %v1588_v57 = vmul.f32 %v445_v43, %v443_v36  ;;  %v456_v58 = vadd.f32 %v455_v45, %v451_v44  ;;  %v1048_v44 = vld [vmem:[%s1527_s27 + $0x18] sm:$0xff]  }
  0x82   : > { %v600_v49 = vmax.f32 %v598_v37, %v599_v42  ;;  %v464_v59 = vsub.f32 %v438_v7, %v462_v40  ;;  %v585_v63 = vsub.f32 %v1544_v1, %v583_v48  ;;  %v662_v2 = vrot.slane %v661_v52, 1 }
  0x83   : > { %v1586_v55 = vcvt.f32.s32 %v1049_v41  ;;  %v726_v3 = vmax.f32 %v724_v39, %v725_v53  ;;  %v1599_v7 = vshrl.u32 %v545_v62, 7 }
  0x84   : > { %v601_v56 = vrot.slane %v600_v49, 1  ;;  %v1597_v8 = vmax.f32 %v661_v52, %v662_v2  ;;  %v717_v10 = vmax.f32 %v585_v63, 0.0 }
  0x85   : > { %v592_v4 = vcvt.s32.f32 %v1586_v55  ;;  %v727_v11 = vrot.slane %v726_v3, 2  ;;  %v1610_v18 = vsub.s32 0, %v1599_v7  ;;  %v1613_v19 = vsub.s32 2, %v1599_v7 }
  0x86   : > { %v1593_v0 = vmax.f32 %v600_v49, %v601_v56  ;;  %v664_v13 = vsub.f32 %v1563_v23, %v1597_v8  ;;  %v665_v16 = vsub.f32 %v1565_v24, %v1597_v8  ;;  %v1615_v25 = vmin.f32 %v717_v10, 14.99 }
  0x87   : > { %v593_v12 = vadd.f32 1.0, %v592_v4  ;;  %v1619_v26 = vadd.s32 8, %v1599_v7  ;;  %v728_v28 = vmax.f32 %v726_v3, %v727_v11  ;;  %v1625_v34 = vsub.s32 1, %v1599_v7 }
  0x88   : > { %v603_v9 = vsub.f32 %v1557_v17, %v1593_v0  ;;  %v604_v1 = vsub.f32 %v1559_v21, %v1593_v0  ;;  %v666_v30 = vmul.f32 1.442695, %v664_v13  ;;  %v668_v37 = vmul.f32 1.442695, %v665_v16 }
  0x89   : > { %v1123_v47 = vpop.eup %1122  ;;  %v1622_v29 = vsub.f32 %v593_v12, %v590_v33  ;;  %v729_v38 = vrot.slane %v728_v28, 1  ;;  %v1633_v41 = vadd.s32 1, %v1586_v55  ;;  %v1051_v33 = vtrunc.f32 %v1615_v25 }
  0x8a   : > { %v1125_v50 = vpop.eup %1124  ;;  %v1582_v51 = vmul.f32 %v1123_v47, %v435_v6  ;;  %v465_v6 = vmul.f32 %v464_v59, %v464_v59  ;;  %v605_v20 = vmul.f32 1.442695, %v603_v9  ;;  %v607_v27 = vmul.f32 1.442695, %v604_v1 }
  0x8b   : > { %v1584_v54 = vmul.f32 %v1125_v50, %v430_v5  ;;  %v457_v5 = vsub.f32 %v456_v58, %v1588_v57  ;;  %v1644_v45 = vmax.f32 %v728_v28, %v729_v38  ;;  %v595_v47 = vsub.f32 1.0, %v1622_v29 }
  0x8c   : > { %v487_v60 = vmax.f32 %v1582_v51, 1e-12  ;;  %v467_v15 = vrot.slane %v465_v6, 1  ;;  %vm486_vm0 = vcmp.gt.f32.partialorder %v1582_v51, 1.0  ;;  %v622_v48 = vrot.slane %v1586_v55, %v1610_v18 }
  0x8d   : > { %v506_v61 = vmax.f32 %v1584_v54, 1e-12  ;;  %v458_v14 = vadd.f32 1e-07, %v457_v5  ;;  %vm505_vm1 = vcmp.gt.f32.partialorder %v1584_v54, 1.0  ;;  %v731_v50 = vsub.f32 %v1575_v31, %v1644_v45 }
  0x8e   : > { %1126 = vrcp.f32 %v487_v60  ;;  %v469_v36 = vadd.f32 %v467_v15, %v465_v6  ;;  %v732_v52 = vsub.f32 %v1577_v32, %v1644_v45  ;;  %v1655_v56 = vunpack.c.l.bf16 %v1048_v44 }
  0x8f   : > { %1128 = vrcp.f32 %v506_v61  ;;  %v635_v58 = vrot.slane %v1633_v41, %v1610_v18  ;;  %v1659_v59 = vcvt.f32.s32 %v1051_v33  ;;  %v1661_v61 = vunpack.c.h.bf16 %v1048_v44 }
  0x90   : > { %1130 = vrcp.f32 %v458_v14  ;;  %v733_v62 = vmul.f32 1.442695, %v731_v50  ;;  %v735_v63 = vmul.f32 1.442695, %v732_v52  ;;  %v470_v2 = vadd.f32 1e-07, %v469_v36 }
  0x91   : > { %1132 = vpow2.f32 %v605_v20  ;;  %v1665_v3 = vmul.f32 %v1561_v22, %v1561_v22  ;;  %v683_v5 = vrot.slane %v1586_v55, %v1625_v34  ;;  %vm623_vm2 = vcmp.eq.s32.totalorder %v1599_v7, %v622_v48 }
  0x92   : > { %1134 = vpow2.f32 %v607_v27  ;;  %v628_v9 = vrot.slane %v1622_v29, %v1610_v18  ;;  %v641_v10 = vrot.slane %v595_v47, %v1610_v18  ;;  %vm636_vm3 = vcmp.eq.s32.totalorder %v1599_v7, %v635_v58 }
  0x93   : > { %1136 = vpow2.f32 %v666_v30  ;;  %v720_v22 = vcvt.s32.f32 %v1659_v59  ;;  %vm624_vm4 = vcmp.eq.s32.totalorder %v1619_v26, %v622_v48  ;;  %vm637_vm5 = vcmp.eq.s32.totalorder %v1619_v26, %v635_v58 }
  0x94   : > { %1138 = vpow2.f32 %v668_v37  ;;  %v480_v13 = vrot.slane %v1665_v3, 1  ;;  %vm684_vm6 = vcmp.eq.s32.totalorder %v1599_v7, %v683_v5  ;;  %v1682_v15 = vsub.s32 3, %v1599_v7 }
  0x95   : > { %1140 = vpow2.f32 %v733_v62  ;;  %v629_v27 = vsel %vm623_vm2, %v628_v9, 0.0  ;;  %v642_v28 = vsel %vm636_vm3, %v641_v10, 0.0  ;;  %v689_v30 = vrot.slane %v1622_v29, %v1625_v34 }
  0x96   : > { %1142 = vpow2.f32 %v735_v63  ;;  %v630_v37 = vsel %vm624_vm4, %v628_v9, 0.0  ;;  %v643_v38 = vsel %vm637_vm5, %v641_v10, 0.0  ;;  %vm685_vm7 = vcmp.eq.s32.totalorder %v1619_v26, %v683_v5 }
  0x97   : > { %1144 = vrcp.f32 %v470_v2  ;;  %v785_v48 = vmax.f32 %v1655_v56, %v1661_v61  ;;  %v644_v52 = vadd.f32 %v642_v28, %v629_v27  ;;  %v645_v62 = vadd.f32 %v643_v38, %v630_v37 }
  0x98   : > { %v1127_v35 = vpop.eup %1126  ;;  %v690_v63 = vsel %vm684_vm6, %v689_v30, 0.0  ;;  %v759_v9 = vadd.s32 1, %v1659_v59  ;;  %v691_v10 = vsel %vm685_vm7, %v689_v30, 0.0  ;;  %vm552_vm2 = vcmask 1042434  }
  0x99   : > { %v1129_v39 = vpop.eup %1128  ;;  %v1630_v40 = vsel %vm486_vm0, %v1127_v35, %v1582_v51  ;;  %v647_v51 = vmul.f32 %v1559_v21, %v645_v62  ;;  %vm848_vm3 = vcmask 1040384   ;;  %vm420_vm4 = vcmask 0  }
  0x9a   : > { %v491_v42 = vmul.f32 %v1630_v40, %v1630_v40  ;;  %v1641_v43 = vsel %vm505_vm1, %v1129_v39, %v1584_v54  ;;  %v1131_v11 = vpop.eup %1130  ;;  %v721_v39 = vadd.f32 1.0, %v720_v22 }
  0x9b   : > { %v510_v46 = vmul.f32 %v1641_v43, %v1641_v43  ;;  %v1133_v55 = vpop.eup %1132 }
  0x9c   : > { %v492_v49 = vmul.f32 0.0208351, %v491_v42  ;;  %v1135_v16 = vpop.eup %1134 }
  0x9d   : > { %v511_v53 = vmul.f32 0.0208351, %v510_v46  ;;  %v1137_v35 = vpop.eup %1136 }
  0x9e   : > { %v493_v60 = vadd.f32 -0.085133, %v492_v49  ;;  %v1139_v33 = vpop.eup %1138  ;;  %v1694_v49 = vmul.f32 %v1131_v11, %v1588_v57  ;;  %v646_v11 = vmul.f32 %v1557_v17, %v644_v52 }
  0x9f   : > { %v512_v4 = vadd.f32 -0.085133, %v511_v53  ;;  %v695_v53 = vrot.slane %v1633_v41, %v1625_v34  ;;  %v786_v41 = vrot.slane %v785_v48, 4 }
  0xa0   : > { %v494_v6 = vmul.f32 %v493_v60, %v491_v42  ;;  %v609_v60 = vadd.f32 %v1135_v16, %v1133_v55 }
  0xa1   : > { %v513_v1 = vmul.f32 %v512_v4, %v510_v46  ;;  %v670_v4 = vadd.f32 %v1139_v33, %v1137_v35  ;;  %vm696_vm8 = vcmp.eq.s32.totalorder %v1599_v7, %v695_v53  ;;  %vm697_vm9 = vcmp.eq.s32.totalorder %v1619_v26, %v695_v53 }
  0xa2   : > { %v495_v12 = vadd.f32 0.180141, %v494_v6  ;;  %v1701_v6 = vsub.f32 %v721_v39, %v1615_v25  ;;  %v787_v55 = vmax.f32 %v785_v48, %v786_v41 }
  0xa3   : > { %v514_v14 = vadd.f32 0.180141, %v513_v1  ;;  %v701_v1 = vrot.slane %v595_v47, %v1625_v34  ;;  %v671_v34 = vrot.slane %v670_v4, 4 }
  0xa4   : > { %v496_v20 = vmul.f32 %v495_v12, %v491_v42  ;;  %v610_v12 = vrot.slane %v609_v60, 4  ;;  %v723_v47 = vsub.f32 1.0, %v1701_v6  ;;  %v788_v27 = vrot.slane %v787_v55, 2 }
  0xa5   : > { %v515_v36 = vmul.f32 %v514_v14, %v510_v46  ;;  %v763_v14 = vrot.slane %v759_v9, %v1613_v19  ;;  %v702_v16 = vsel %vm696_vm8, %v701_v1, 0.0  ;;  %v703_v30 = vsel %vm697_vm9, %v701_v1, 0.0 }
  0xa6   : > { %v497_v44 = vadd.f32 -0.3302995, %v496_v20  ;;  %v789_v37 = vmax.f32 %v787_v55, %v788_v27  ;;  %v672_v39 = vadd.f32 %v671_v34, %v670_v4  ;;  %v769_v33 = vrot.slane %v723_v47, %v1613_v19 }
  0xa7   : > { %v516_v50 = vadd.f32 -0.3302995, %v515_v36  ;;  %v611_v36 = vadd.f32 %v610_v12, %v609_v60  ;;  %vm764_vm12 = vcmp.eq.s32.totalorder %v1599_v7, %v763_v14  ;;  %vm765_vm13 = vcmp.eq.s32.totalorder %v1619_v26, %v763_v14 }
  0xa8   : > { %v498_v58 = vmul.f32 %v497_v44, %v491_v42  ;;  %v1141_v42 = vpop.eup %1140  ;;  %v704_v52 = vadd.f32 %v702_v16, %v690_v63  ;;  %v705_v53 = vadd.f32 %v703_v30, %v691_v10  ;;  %v770_v1 = vsel %vm764_vm12, %v769_v33, 0.0 }
  0xa9   : > { %v517_v2 = vmul.f32 %v516_v50, %v510_v46  ;;  %v750_v46 = vrot.slane %v1659_v59, %v1613_v19  ;;  %v1143_v25 = vpop.eup %1142  ;;  %v790_v50 = vrot.slane %v789_v37, 1  ;;  %v612_v54 = vrot.slane %v611_v36, 2 }
  0xaa   : > { %v499_v57 = vadd.f32 0.999866, %v498_v58  ;;  %v737_v20 = vadd.f32 %v1143_v25, %v1141_v42  ;;  %v1719_v35 = vpop.eup %1144  ;;  %v771_v41 = vsel %vm765_vm13, %v769_v33, 0.0  ;;  %v811_v42 = vrot.slane %v1659_v59, %v1682_v15 }
  0xab   : > { %v518_v22 = vadd.f32 0.999866, %v517_v2  ;;  %vm751_vm10 = vcmp.eq.s32.totalorder %v1599_v7, %v750_v46  ;;  %vm752_vm11 = vcmp.eq.s32.totalorder %v1619_v26, %v750_v46  ;;  %v1734_v4 = vmax.f32 %v789_v37, %v790_v50 }
  0xac   : > { %v500_v5 = vmul.f32 %v499_v57, %v1630_v40  ;;  %v756_v40 = vrot.slane %v1701_v6, %v1613_v19  ;;  %v738_v48 = vrot.slane %v737_v20, 4  ;;  %v673_v57 = vrot.slane %v672_v39, 2 }
  0xad   : > { %v519_v29 = vmul.f32 %v518_v22, %v1641_v43  ;;  %v792_v62 = vsub.f32 %v1655_v56, %v1734_v4  ;;  %v793_v63 = vsub.f32 %v1661_v61, %v1734_v4  ;;  %v648_v10 = vadd.f32 %v647_v51, %v646_v11 }
  0xae   : > { %v501_v17 = vsub.f32 1.5707964, %v500_v5  ;;  %v757_v58 = vsel %vm751_vm10, %v756_v40, 0.0  ;;  %v758_v2 = vsel %vm752_vm11, %v756_v40, 0.0  ;;  %v739_v21 = vadd.f32 %v738_v48, %v737_v20 }
  0xaf   : > { %v520_v28 = vsub.f32 1.5707964, %v519_v29  ;;  %v706_v46 = vmul.f32 %v1563_v23, %v704_v52  ;;  %v707_v25 = vmul.f32 %v1565_v24, %v705_v53  ;;  %v613_v55 = vadd.f32 %v612_v54, %v611_v36 }
  0xb0   : > { %v502_v43 = vsel %vm486_vm0, %v501_v17, %v500_v5  ;;  %v823_v5 = vrot.slane %v759_v9, %v1682_v15  ;;  %v794_v59 = vmul.f32 1.442695, %v792_v62  ;;  %v674_v34 = vadd.f32 %v673_v57, %v672_v39 }
  0xb1   : > { %v521_v38 = vsel %vm505_vm1, %v520_v28, %v519_v29  ;;  %v772_v29 = vadd.f32 %v770_v1, %v757_v58  ;;  %v773_v14 = vadd.f32 %v771_v41, %v758_v2  ;;  %v796_v17 = vmul.f32 1.442695, %v793_v63 }
  0xb2   : > { %v522_v44 = vsub.f32 %v502_v43, %v521_v38  ;;  %v817_v16 = vrot.slane %v1701_v6, %v1682_v15  ;;  %v740_v27 = vrot.slane %v739_v21, 2  ;;  %vm812_vm14 = vcmp.eq.s32.totalorder %v1599_v7, %v811_v42 }
  0xb3   : > { %v829_v23 = vrot.slane %v723_v47, %v1682_v15  ;;  %1146 = vpow2.f32 %v794_v59  ;;  %vm813_vm15 = vcmp.eq.s32.totalorder %v1619_v26, %v811_v42  ;;  %vm824_vm0 = vcmp.eq.s32.totalorder %v1599_v7, %v823_v5 }
  0xb4   : > { %v523_v60 = vmul.f32 %v522_v44, %v522_v44  ;;  %vm825_vm1 = vcmp.eq.s32.totalorder %v1619_v26, %v823_v5  ;;  %v614_v24 = vrot.slane %v613_v55, 1  ;;  %v708_v9 = vadd.f32 %v707_v25, %v706_v46  ;;  %v426_v25 = vld [vmem:[%s408_s11] sm:$0x1] }
  0xb5   : > { %v774_v11 = vmul.f32 %v1575_v31, %v772_v29  ;;  %v675_v28 = vrot.slane %v674_v34, 1  ;;  %v775_v6 = vmul.f32 %v1577_v32, %v773_v14  ;;  %v818_v30 = vsel %vm812_vm14, %v817_v16, 0.0 }
  0xb6   : > { %v524_v22 = vmul.f32 0.40528473, %v523_v60  ;;  %v741_v40 = vadd.f32 %v740_v27, %v739_v21  ;;  %v819_v43 = vsel %vm813_vm15, %v817_v16, 0.0  ;;  %v830_v15 = vsel %vm824_vm0, %v829_v23, 0.0 }
  0xb7   : > { %v831_v47 = vsel %vm825_vm1, %v829_v23, 0.0  ;;  %v482_v7 = vadd.f32 %v480_v13, %v1665_v3  ;;  %v615_v36 = vadd.f32 %v614_v24, %v613_v55  ;;  %v649_v26 = vrot.slane %v648_v10, 4 }
  0xb8   : > { %v525_v12 = vsub.f32 %v524_v22, %v1694_v49  ;;  %v832_v37 = vadd.f32 %v830_v15, %v818_v30  ;;  %v833_v38 = vadd.f32 %v831_v47, %v819_v43  ;;  %v676_v39 = vadd.f32 %v675_v28, %v674_v34 }
  0xb9   : > { %v709_v33 = vrot.slane %v708_v9, 4  ;;  %v742_v31 = vrot.slane %v741_v40, 1  ;;  %v776_v44 = vadd.f32 %v775_v6, %v774_v11  ;;  %v483_v48 = vmul.f32 0.25, %v482_v7 }
  0xba   : > { %v526_v20 = vadd.f32 1.0000001, %v525_v12  ;;  %v531_v32 = vrot.slane %v1719_v35, 2  ;;  %v650_v51 = vadd.f32 %v649_v26, %v648_v10  ;;  %v834_v52 = vmul.f32 %v1655_v56, %v832_v37 }
  0xbb   : > { %v835_v53 = vmul.f32 %v1661_v61, %v833_v38  ;;  %v710_v3 = vadd.f32 %v709_v33, %v708_v9  ;;  %v743_v13 = vadd.f32 %v742_v31, %v741_v40  ;;  %v777_v60 = vrot.slane %v776_v44, 4 }
  0xbc   : > { %1148 = vrcp.f32 %v526_v20  ;;  %v533_v1 = vmul.f32 %v531_v32, %v483_v48  ;;  %v651_v42 = vrot.slane %v650_v51, 2  ;;  %v548_v16 = vrot.slane %v426_v25, %v1610_v18 }
  0xbd   : > { %1150 = vpow2.f32 %v796_v17  ;;  %v1147_v50 = vpop.eup %1146  ;;  %v836_v35 = vadd.f32 %v835_v53, %v834_v52  ;;  %v711_v21 = vrot.slane %v710_v3, 2  ;;  %v778_v62 = vadd.f32 %v777_v60, %v776_v44 }
  0xbe   : > { %1152 = vlog2.f32 %v615_v36  ;;  %v652_v5 = vadd.f32 %v651_v42, %v650_v51 }
  0xbf   : > { %1154 = vlog2.f32 %v676_v39  ;;  %v837_v46 = vrot.slane %v836_v35, 4  ;;  %v712_v12 = vadd.f32 %v711_v21, %v710_v3  ;;  %v779_v55 = vrot.slane %v778_v62, 2 }
  0xc0   : > { %1156 = vlog2.f32 %v743_v13  ;;  %v653_v27 = vrot.slane %v652_v5, 1 }
  0xc1   : > { %v838_v20 = vadd.f32 %v837_v46, %v836_v35  ;;  %v713_v23 = vrot.slane %v712_v12, 1  ;;  %v780_v24 = vadd.f32 %v779_v55, %v778_v62 }
  0xc2   : > { %v654_v47 = vadd.f32 %v653_v27, %v652_v5 }
  0xc3   : > { %v839_v15 = vrot.slane %v838_v20, 2  ;;  %v714_v7 = vadd.f32 %v713_v23, %v712_v12  ;;  %v781_v36 = vrot.slane %v780_v24, 1 }
  0xc5   : > { %v840_v38 = vadd.f32 %v839_v15, %v838_v20  ;;  %v782_v44 = vadd.f32 %v781_v36, %v780_v24 }
  0xc6   : > { %v1149_v58 = vpop.eup %1148 }
  0xc7   : > { %v1151_v54 = vpop.eup %1150  ;;  %v528_v2 = vmul.f32 %v1149_v58, %v524_v22  ;;  %v841_v48 = vrot.slane %v840_v38, 1 }
  0xc8   : > { %v798_v57 = vadd.f32 %v1151_v54, %v1147_v50 }
  0xc9   : > { %v534_v41 = vmul.f32 %v528_v2, %v524_v22  ;;  %v1153_v22 = vpop.eup %1152  ;;  %v842_v53 = vadd.f32 %v841_v48, %v840_v38 }
  0xca   : > { %v799_v63 = vrot.slane %v798_v57, 4  ;;  %v1155_v34 = vpop.eup %1154  ;;  %v617_v28 = vmul.f32 0.6931472, %v1153_v22 }
  0xcb   : > { %v536_v56 = vrot.slane %v534_v41, 2  ;;  %v678_v6 = vmul.f32 0.6931472, %v1155_v34  ;;  %v1157_v30 = vpop.eup %1156 }
  0xcc   : > { %v800_v61 = vadd.f32 %v799_v63, %v798_v57  ;;  %v618_v18 = vadd.f32 %v617_v28, %v1593_v0  ;;  %v745_v37 = vmul.f32 0.6931472, %v1157_v30 }
  0xcd   : > { %v538_v10 = vadd.f32 %v536_v56, %v533_v1  ;;  %v679_v26 = vadd.f32 %v678_v6, %v1597_v8 }
  0xce   : > { %v801_v29 = vrot.slane %v800_v61, 2  ;;  %v655_v39 = vsub.f32 %v618_v18, %v654_v47  ;;  %v746_v31 = vadd.f32 %v745_v37, %v1644_v45  ;;  %v1312_v45 = vmov 0.0  }
  0xcf   : > { %v540_v59 = vrot.slane %v538_v10, 6  ;;  %v715_v33 = vsub.f32 %v679_v26, %v714_v7  ;;  %421 = vst.msk [vmem:[%s412_s21] sm:$0x1] %vm420_vm4, %v1312_v45  ;;  %422 = vst.msk [vmem:[%s415_s16] sm:$0x1] %vm420_vm4, %v1312_v45 }
  0xd0   : > { %v802_v14 = vadd.f32 %v801_v29, %v800_v61  ;;  %v783_v50 = vsub.f32 %v746_v31, %v782_v44 }
  0xd1   : > { %v542_v17 = vsub.f32 %v1694_v49, %v540_v59  ;;  %v716_v32 = vadd.f32 %v715_v33, %v655_v39 }
  0xd2   : > { %v803_v9 = vrot.slane %v802_v14, 1 }
  0xd3   : > { %v543_v11 = vsub.f32 1.0, %v542_v17  ;;  %v784_v58 = vadd.f32 %v783_v50, %v716_v32 }
  0xd4   : > { %v804_v40 = vadd.f32 %v803_v9, %v802_v14 }
  0xd5   : > { %v550_v43 = vmul.f32 %v548_v16, %v543_v11 }
  0xd6   : > { %1158 = vlog2.f32 %v804_v40  ;;  %v551_v2 = vld [vmem:[%s412_s21] sm:$0x1] }
  0xd7   : > { %v553_v49 = vsel %vm552_vm2, %v550_v43, 0.0  ;;  %v847_v41 = vld [vmem:[%s415_s16] sm:$0x1] }
  0xd8   : > { %554 = vadd.xlane.f32.xlu0 %v553_v49 }
  0xe0   : > { %v1159_v51 = vpop.eup %1158 }
  0xe1   : > { %v806_v52 = vmul.f32 0.6931472, %v1159_v51 }
  0xe3   : > { %v807_v0 = vadd.f32 %v806_v52, %v1734_v4 }
  0xe5   : > { %v843_v8 = vsub.f32 %v807_v0, %v842_v53 }
  0xe7   : > { %v844_v3 = vadd.f32 %v843_v8, %v784_v58 }
  0xe9   : > { %v845_v13 = vmul.f32 0.25, %v844_v3 }
  0xeb   : > { %v846_v60 = vmul.f32 %v845_v13, %v426_v25 }
  0xed   : > { %v849_v54 = vsel %vm848_vm3, %v846_v60, 0.0 }
  0xee   : > { %850 = vadd.xlane.f32.xlu0 %v849_v54 }
 0x165   : > { %v555_v4 = vpop.xlane.xlu0 %554 }
 0x166   : > { %v560_v57 = vrot.slane %v555_v4, %v1613_v19 }
 0x168   : > { %v562_v1 = vadd.f32 %v560_v57, %v551_v2 }
 0x16a   : > { %564 = vst.msk [vmem:[%s412_s21] sm:$0x1] %vm420_vm4, %v562_v1 }
 0x17b   : > { %v851_v42 = vpop.xlane.xlu0 %850 }
 0x17c   : > { %v852_v35 = vadd.f32 %v851_v42, %v847_v41 }
 0x17e   : > { %853 = vst.msk [vmem:[%s415_s16] sm:$0x1] %vm420_vm4, %v852_v35 }
 0x17f PF: > { %s23_s26 = sadd.s32 1, %s1304_s26   ;;  %s1829_s24 = sld [smem:[#allocation9_spill]] }
 0x180   : > { %p20_p3 = scmp.ge.s32.totalorder %s23_s26, 4   ;;  %s1830_s25 = sld [smem:[#allocation10_spill]] }
 0x181   : > { %s1831_s21 = smov %s1288_s22  ;;  %s1832_s22 = smov %s1292_s23 }
 0x182   : > { %s1833_s23 = smov %s1399_s9  ;;  %22 = sbr.rel (!%p20_p3) target bundleno = 9 (0x9), region = 126 }
 0x189   :  { %883 = vsyncpa [#allocation3], 1 }
 0x18a   :  { %885 = vsyncpa [#allocation3 + $0x1], 1 }
 0x18b   :  { %886 = vsyncpa [#allocation5], 1 }
 0x18c   :  { %888 = vsyncpa [#allocation5 + $0x1], 1 }

</bundles_post_ra>
